<compile_context>
chip_gen: v7x
topology: tpu7x:2x2x1
jax: 0.10.0
libtpu: 0.0.40
codegen_flags: <defaults>
</compile_context>

<pallas_src>
import functools

import jax
import jax.numpy as jnp
import numpy as np
from jax import lax
from jax.experimental import pallas as pl
from jax.experimental.pallas import tpu as pltpu


def _make_kernel(train: bool, drop_p: float, resident: bool, ts: int, n_s_steps: int):
    """Builds the fused scaled-softmax-attention kernel (online softmax)."""
    keep_scale = 1.0 / (1.0 - drop_p) if train else 1.0
    # P(drop) = P(bits < threshold) = threshold / 2^32 ~= drop_p
    drop_threshold = np.uint32(min(int(drop_p * (2.0 ** 32)), 2 ** 32 - 1))

    def kernel(seed_ref, x1_ref, x2_ref, o_ref, m_sc, l_sc, q_sc):
        si = pl.program_id(1)
        n_s = pl.num_programs(1)

        @pl.when(si == 0)
        def _():
            # *10 scale folded into q, hoisted out of the reduction loop:
            # computed once per query tile, reused for every key tile.
            q_sc[...] = (x1_ref[...] * 10.0).astype(jnp.bfloat16)
            m_sc[...] = jnp.full_like(m_sc, -jnp.inf)
            l_sc[...] = jnp.zeros_like(l_sc)
            # accumulate directly into the VMEM-resident f32 output block
            o_ref[...] = jnp.zeros_like(o_ref)
            if train:
                # seed once per query tile; the stateful PRNG advances across
                # key tiles (grid steps are sequential on a TensorCore).
                pltpu.prng_seed(seed_ref[0] + pl.program_id(0))

        q = q_sc[...]                                                     # (tb, D) bf16
        if resident and n_s_steps > 1:
            start = pl.multiple_of(si * ts, ts)
            k = x2_ref[pl.ds(start, ts), :]                               # slice of resident K==V
        else:
            k = x2_ref[...]                                               # (ts, D) bf16

        # scores: contract the shared D axis directly -- no k.T materialization
        s = lax.dot_general(
            q, k, dimension_numbers=(((1,), (1,)), ((), ())),
            preferred_element_type=jnp.float32)                           # (tb, ts)

        # online softmax update (all elementwise math in f32 on the VPU)
        m_prev = m_sc[...]
        m_new = jnp.maximum(m_prev, jnp.max(s, axis=-1, keepdims=True))
        alpha = jnp.exp(m_prev - m_new)
        p = jnp.exp(s - m_new)                                            # (tb, ts)

        # denominator accumulated from the UNdropped probabilities
        l_sc[...] = alpha * l_sc[...] + jnp.sum(p, axis=-1, keepdims=True)

        if train:
            # integer-threshold dropout on raw hardware-PRNG bits
            bits = pltpu.bitcast(pltpu.prng_random_bits(p.shape), jnp.uint32)
            p = jnp.where(bits >= drop_threshold, p, 0.0)
            # the 1/(1-p) inverted scaling is folded into the final reciprocal

        # numerator: (tb, ts) @ (ts, D) on the MXU, bf16 operands / f32 acc,
        # accumulated straight into the resident output block
        o_ref[...] = alpha * o_ref[...] + lax.dot_general(
            p.astype(jnp.bfloat16), k,
            dimension_numbers=(((1,), (0,)), ((), ())),
            preferred_element_type=jnp.float32)                           # (tb, D)

        m_sc[...] = m_new

        @pl.when(si == n_s - 1)
        def _():
            inv = pl.reciprocal(l_sc[...], approx=True)                   # EUP vrcp
            if keep_scale != 1.0:
                inv = inv * jnp.float32(keep_scale)
            o_ref[...] = o_ref[...] * inv

    return kernel


def _choose_tile(n, max_tile):
    """Largest tile <= max_tile that divides n (multiple of 8), else full n."""
    if n <= max_tile:
        return n
    t = (max_tile // 8) * 8
    while t >= 8:
        if n % t == 0:
            return t
        t -= 8
    # TODO(synk): no multiple-of-8 divisor -> one full tile; huge odd dims could
    # exceed the scoped-VMEM budget (acceptable for the shapes this model sees).
    return n


def _query_tile(B):
    """Query tile: prefer >= 2 row tiles so the parallel axis feeds both v7x TCs."""
    if B < 16:
        return B
    cap = min(256, max(8, (B // 2) // 8 * 8))
    return _choose_tile(B, cap)


@functools.partial(jax.jit, static_argnames=("train", "drop_p"))
def model_forward(x1, x2, seed, *, train: bool = False, drop_p: float = 0.1):
    B, D = x1.shape
    S, D2 = x2.shape
    assert D == D2, "inner dims of x1 and x2 must match"

    x1 = x1.astype(jnp.float32)
    x2 = x2.astype(jnp.float32)

    # Pad the shared D axis to a multiple of 128: lane-dense output stores and
    # full MXU tiles.  Zero padding does not change the scores or valid columns.
    Dp = D if D % 128 == 0 else ((D // 128) + 1) * 128
    if Dp != D:
        x1 = jnp.pad(x1, ((0, 0), (0, Dp - D)))
        x2 = jnp.pad(x2, ((0, 0), (0, Dp - D)))

    # Stream K==V as bf16 (MXU operand dtype anyway): halves its HBM traffic and
    # removes a (ts, D) convert from every reduction step.
    x2 = x2.astype(jnp.bfloat16)

    tb = _query_tile(B)                      # query-row tile (parallel axis)
    ts_cap = 512                             # key-row tile (reduction axis)
    while ts_cap > 8 and ts_cap * Dp * 2 > (4 << 20):
        ts_cap //= 2                         # keep one x2 block <= 4 MiB
    ts = _choose_tile(S, ts_cap)

    n_b = B // tb
    n_s = S // ts
    grid = (n_b, n_s)

    # Keep x2 fully VMEM-resident (one DMA total, no per-query-tile restream)
    # when it fits a comfortable budget.
    resident = S * Dp * 2 <= (8 << 20)

    kernel = _make_kernel(train, drop_p, resident, ts, n_s)

    if resident:
        x2_spec = pl.BlockSpec((S, Dp), lambda i, j, s: (0, 0))
    else:
        x2_spec = pl.BlockSpec((ts, Dp), lambda i, j, s: (j, 0))

    grid_spec = pltpu.PrefetchScalarGridSpec(
        num_scalar_prefetch=1,                                   # seed -> SMEM
        grid=grid,
        in_specs=[
            pl.BlockSpec((tb, Dp), lambda i, j, s: (i, 0)),      # x1 tile
            x2_spec,                                             # x2 (K == V)
        ],
        out_specs=pl.BlockSpec((tb, Dp), lambda i, j, s: (i, 0)),
        scratch_shapes=[
            pltpu.VMEM((tb, 1), jnp.float32),    # running max m
            pltpu.VMEM((tb, 1), jnp.float32),    # running sum l
            pltpu.VMEM((tb, Dp), jnp.bfloat16),  # hoisted scaled q
        ],
    )

    # Explicit scoped-VMEM budget derived from the actual tile bytes
    # (v5e default 16 MiB, v7x 32 MiB of 64 MiB physical).
    x2_blk_bytes = (S if resident else ts) * Dp * 2
    need = (2 * tb * Dp * 4          # x1 blocks (double-buffered, f32)
            + 2 * x2_blk_bytes       # x2 blocks (bf16)
            + 2 * tb * Dp * 4        # output blocks (f32)
            + tb * Dp * 2            # q scratch (bf16)
            + 2 * tb * 4)            # m / l scratch
    vmem_limit = int(min(max(2 * need + (2 << 20), 16 << 20), 64 << 20))

    x2_hbm_reads = 1 if resident else n_b
    cost = pl.CostEstimate(
        flops=2 * 2 * B * S * Dp,
        transcendentals=B * S,
        bytes_accessed=(B * Dp * 4                      # x1 (f32, once)
                        + x2_hbm_reads * S * Dp * 2     # x2 (bf16)
                        + B * Dp * 4),                  # output (f32)
    )

    out = pl.pallas_call(
        kernel,
        out_shape=jax.ShapeDtypeStruct((B, Dp), jnp.float32),
        grid_spec=grid_spec,
        compiler_params=pltpu.CompilerParams(
            dimension_semantics=("parallel", "arbitrary"),
            vmem_limit_bytes=vmem_limit),
        cost_estimate=cost,
    )(seed, x1, x2)

    return out[:, :D] if Dp != D else out


def _reference_f32(x1, x2):
    """Pure-JAX f32 reference (eval-mode dropout == identity)."""
    v1 = x1 @ x2.T
    v2 = v1 * 10.0
    v3 = jax.nn.softmax(v2, axis=-1)
    return v3 @ x2


def _reference_bf16_mxu(x1, x2):
    """Reference mimicking the kernel's bf16 MXU operands (f32 accumulation)."""
    q = (x1 * 10.0).astype(jnp.bfloat16)
    k = x2.astype(jnp.bfloat16)
    s = lax.dot_general(q, k, dimension_numbers=(((1,), (1,)), ((), ())),
                        preferred_element_type=jnp.float32)
    p = jax.nn.softmax(s, axis=-1)
    return lax.dot_general(p.astype(jnp.bfloat16), k,
                           dimension_numbers=(((1,), (0,)), ((), ())),
                           preferred_element_type=jnp.float32)


if __name__ == "__main__":
    # Small consistent shapes implied by the forward pass: x1 (B, D), x2 (S, D).
    B, S, D = 8, 16, 32

    key = jax.random.PRNGKey(0)
    k1, k2 = jax.random.split(key)
    x1 = jax.random.normal(k1, (B, D), dtype=jnp.float32)
    x2 = jax.random.normal(k2, (S, D), dtype=jnp.float32)
    seed = jnp.array([0], dtype=jnp.int32)

    # Eval mode (deterministic, dropout == identity), matching model.eval().
    # TODO(synk): training-mode dropout uses the TPU hardware PRNG
    # (pltpu.prng_seed / prng_random_bits); it has no CPU/interpret lowering and
    # cannot bit-match torch's RNG stream, so it is not exercised in this demo.
    out = jax.block_until_ready(model_forward(x1, x2, seed, train=False))

    ref = _reference_bf16_mxu(x1, x2)
    np.testing.assert_allclose(np.asarray(out), np.asarray(ref),
                               rtol=2e-2, atol=2e-2)

    print("KERNEL_OK")
</pallas_src>

<mosaic_0001>
module attributes {stable_mosaic.version = 11 : i64} {
  func.func @kernel(%arg0: i32, %arg1: i32, %arg2: memref<1xi32, #tpu.memory_space<smem>>, %arg3: memref<8x128xf32, #tpu.memory_space<vmem>>, %arg4: memref<16x128xbf16, #tpu.memory_space<vmem>>, %arg5: memref<8x128xf32, #tpu.memory_space<vmem>>, %arg6: memref<8x1xf32, #tpu.memory_space<vmem>>, %arg7: memref<8x1xf32, #tpu.memory_space<vmem>>, %arg8: memref<8x128xbf16, #tpu.memory_space<vmem>>) attributes {dimension_semantics = [#tpu.dimension_semantics<parallel>, #tpu.dimension_semantics<arbitrary>], iteration_bounds = array<i64: 1, 1>, scalar_prefetch = 1 : i64, scratch_operands = 3 : i64, tpu.core_type = #tpu.core_type<tc>, window_params = [{transform_indices = @transform_0, window_bounds = array<i64: 8, 128>}, {pipeline_mode = #tpu.pipeline_mode<synchronous>, transform_indices = @transform_1, window_bounds = array<i64: 16, 128>}, {transform_indices = @transform_2, window_bounds = array<i64: 8, 128>}]} {
    %c0_i32 = arith.constant 0 : i32
    %0 = arith.cmpi eq, %arg1, %c0_i32 : i32
    %1 = arith.extui %0 : i1 to i32
    %c0_i32_0 = arith.constant 0 : i32
    %2 = arith.cmpi ne, %1, %c0_i32_0 : i32
    scf.if %2 {
      %c0_21 = arith.constant 0 : index
      %c0_22 = arith.constant 0 : index
      %32 = vector.load %arg3[%c0_21, %c0_22] : memref<8x128xf32, #tpu.memory_space<vmem>>, vector<8x128xf32>
      %cst_23 = arith.constant 1.000000e+01 : f32
      %33 = vector.broadcast %cst_23 : f32 to vector<8x128xf32>
      %34 = arith.mulf %32, %33 : vector<8x128xf32>
      %35 = arith.truncf %34 : vector<8x128xf32> to vector<8x128xbf16>
      %c0_24 = arith.constant 0 : index
      %c0_25 = arith.constant 0 : index
      %36 = vector.load %arg8[%c0_24, %c0_25] : memref<8x128xbf16, #tpu.memory_space<vmem>>, vector<8x128xbf16>
      tpu.vector_store %arg8[%c0_24, %c0_25], %35 {strides = array<i32>} : memref<8x128xbf16, #tpu.memory_space<vmem>>, vector<8x128xbf16>,
      %cst_26 = arith.constant 0xFF800000 : f32
      %37 = vector.broadcast %cst_26 : f32 to vector<8x1xf32>
      %c0_27 = arith.constant 0 : index
      %c0_28 = arith.constant 0 : index
      %38 = vector.load %arg6[%c0_27, %c0_28] : memref<8x1xf32, #tpu.memory_space<vmem>>, vector<8x1xf32>
      tpu.vector_store %arg6[%c0_27, %c0_28], %37 {strides = array<i32>} : memref<8x1xf32, #tpu.memory_space<vmem>>, vector<8x1xf32>,
      %cst_29 = arith.constant 0.000000e+00 : f32
      %39 = vector.broadcast %cst_29 : f32 to vector<8x1xf32>
      %c0_30 = arith.constant 0 : index
      %c0_31 = arith.constant 0 : index
      %40 = vector.load %arg7[%c0_30, %c0_31] : memref<8x1xf32, #tpu.memory_space<vmem>>, vector<8x1xf32>
      tpu.vector_store %arg7[%c0_30, %c0_31], %39 {strides = array<i32>} : memref<8x1xf32, #tpu.memory_space<vmem>>, vector<8x1xf32>,
      %cst_32 = arith.constant 0.000000e+00 : f32
      %41 = vector.broadcast %cst_32 : f32 to vector<8x128xf32>
      %c0_33 = arith.constant 0 : index
      %c0_34 = arith.constant 0 : index
      %42 = vector.load %arg5[%c0_33, %c0_34] : memref<8x128xf32, #tpu.memory_space<vmem>>, vector<8x128xf32>
      tpu.vector_store %arg5[%c0_33, %c0_34], %41 {strides = array<i32>} : memref<8x128xf32, #tpu.memory_space<vmem>>, vector<8x128xf32>,
    } else {
    }
    %c0 = arith.constant 0 : index
    %c0_1 = arith.constant 0 : index
    %3 = vector.load %arg8[%c0, %c0_1] : memref<8x128xbf16, #tpu.memory_space<vmem>>, vector<8x128xbf16>
    %c0_2 = arith.constant 0 : index
    %c0_3 = arith.constant 0 : index
    %4 = vector.load %arg4[%c0_2, %c0_3] : memref<16x128xbf16, #tpu.memory_space<vmem>>, vector<16x128xbf16>
    %cst = arith.constant dense<0.000000e+00> : vector<8x16xf32>
    %5 = tpu.matmul %3, %4, %cst {dimension_numbers = #tpu.dot_dimension_numbers<[1], [1], [0], [0], [0, 0, 1, 0], [], []>} : vector<8x128xbf16>, vector<16x128xbf16>, vector<8x16xf32> -> vector<8x16xf32>
    %c0_4 = arith.constant 0 : index
    %c0_5 = arith.constant 0 : index
    %6 = vector.load %arg6[%c0_4, %c0_5] : memref<8x1xf32, #tpu.memory_space<vmem>>, vector<8x1xf32>
    %cst_6 = arith.constant dense<0xFF800000> : vector<8xf32>
    %7 = vector.multi_reduction <maximumf>, %5, %cst_6 [1] : vector<8x16xf32> to vector<8xf32>
    %8 = vector.shape_cast %7 : vector<8xf32> to vector<8x1xf32>
    %9 = arith.maximumf %6, %8 : vector<8x1xf32>
    %10 = arith.subf %6, %9 : vector<8x1xf32>
    %11 = math.exp %10 : vector<8x1xf32>
    %12 = vector.broadcast %9 : vector<8x1xf32> to vector<8x16xf32>
    %13 = arith.subf %5, %12 : vector<8x16xf32>
    %14 = math.exp %13 : vector<8x16xf32>
    %c0_7 = arith.constant 0 : index
    %c0_8 = arith.constant 0 : index
    %15 = vector.load %arg7[%c0_7, %c0_8] : memref<8x1xf32, #tpu.memory_space<vmem>>, vector<8x1xf32>
    %16 = arith.mulf %11, %15 : vector<8x1xf32>
    %cst_9 = arith.constant dense<0.000000e+00> : vector<8xf32>
    %17 = vector.multi_reduction <add>, %14, %cst_9 [1] : vector<8x16xf32> to vector<8xf32>
    %18 = vector.shape_cast %17 : vector<8xf32> to vector<8x1xf32>
    %19 = arith.addf %16, %18 : vector<8x1xf32>
    %c0_10 = arith.constant 0 : index
    %c0_11 = arith.constant 0 : index
    %20 = vector.load %arg7[%c0_10, %c0_11] : memref<8x1xf32, #tpu.memory_space<vmem>>, vector<8x1xf32>
    tpu.vector_store %arg7[%c0_10, %c0_11], %19 {strides = array<i32>} : memref<8x1xf32, #tpu.memory_space<vmem>>, vector<8x1xf32>,
    %c0_12 = arith.constant 0 : index
    %c0_13 = arith.constant 0 : index
    %21 = vector.load %arg5[%c0_12, %c0_13] : memref<8x128xf32, #tpu.memory_space<vmem>>, vector<8x128xf32>
    %22 = vector.broadcast %11 : vector<8x1xf32> to vector<8x128xf32>
    %23 = arith.mulf %22, %21 : vector<8x128xf32>
    %24 = arith.truncf %14 : vector<8x16xf32> to vector<8x16xbf16>
    %cst_14 = arith.constant dense<0.000000e+00> : vector<8x128xf32>
    %25 = tpu.matmul %24, %4, %cst_14 {dimension_numbers = #tpu.dot_dimension_numbers<[1], [0], [0], [1], [0, 0, 1, 1], [], []>} : vector<8x16xbf16>, vector<16x128xbf16>, vector<8x128xf32> -> vector<8x128xf32>
    %26 = arith.addf %23, %25 : vector<8x128xf32>
    %c0_15 = arith.constant 0 : index
    %c0_16 = arith.constant 0 : index
    %27 = vector.load %arg5[%c0_15, %c0_16] : memref<8x128xf32, #tpu.memory_space<vmem>>, vector<8x128xf32>
    tpu.vector_store %arg5[%c0_15, %c0_16], %26 {strides = array<i32>} : memref<8x128xf32, #tpu.memory_space<vmem>>, vector<8x128xf32>,
    %c0_17 = arith.constant 0 : index
    %c0_18 = arith.constant 0 : index
    %28 = vector.load %arg6[%c0_17, %c0_18] : memref<8x1xf32, #tpu.memory_space<vmem>>, vector<8x1xf32>
    tpu.vector_store %arg6[%c0_17, %c0_18], %9 {strides = array<i32>} : memref<8x1xf32, #tpu.memory_space<vmem>>, vector<8x1xf32>,
    %c0_i32_19 = arith.constant 0 : i32
    %29 = arith.cmpi eq, %arg1, %c0_i32_19 : i32
    %30 = arith.extui %29 : i1 to i32
    %c0_i32_20 = arith.constant 0 : i32
    %31 = arith.cmpi ne, %30, %c0_i32_20 : i32
    scf.if %31 {
      %c0_21 = arith.constant 0 : index
      %c0_22 = arith.constant 0 : index
      %32 = vector.load %arg7[%c0_21, %c0_22] : memref<8x1xf32, #tpu.memory_space<vmem>>, vector<8x1xf32>
      %33 = tpu.reciprocal %32 {approx = true} : vector<8x1xf32> -> vector<8x1xf32>
      %c0_23 = arith.constant 0 : index
      %c0_24 = arith.constant 0 : index
      %34 = vector.load %arg5[%c0_23, %c0_24] : memref<8x128xf32, #tpu.memory_space<vmem>>, vector<8x128xf32>
      %35 = vector.broadcast %33 : vector<8x1xf32> to vector<8x128xf32>
      %36 = arith.mulf %34, %35 : vector<8x128xf32>
      %c0_25 = arith.constant 0 : index
      %c0_26 = arith.constant 0 : index
      %37 = vector.load %arg5[%c0_25, %c0_26] : memref<8x128xf32, #tpu.memory_space<vmem>>, vector<8x128xf32>
      tpu.vector_store %arg5[%c0_25, %c0_26], %36 {strides = array<i32>} : memref<8x128xf32, #tpu.memory_space<vmem>>, vector<8x128xf32>,
    } else {
    }
    return
  }
  func.func @transform_0(%arg0: i32, %arg1: i32, %arg2: memref<1xi32, #tpu.memory_space<smem>>) -> (i32, i32) {
    %c0_i32 = arith.constant 0 : i32
    %c0_i32_0 = arith.constant 0 : i32
    return %arg0, %c0_i32 : i32, i32
  }
  func.func @transform_1(%arg0: i32, %arg1: i32, %arg2: memref<1xi32, #tpu.memory_space<smem>>) -> (i32, i32) {
    %c0_i32 = arith.constant 0 : i32
    %c0_i32_0 = arith.constant 0 : i32
    %c0_i32_1 = arith.constant 0 : i32
    return %c0_i32, %c0_i32_0 : i32, i32
  }
  func.func @transform_2(%arg0: i32, %arg1: i32, %arg2: memref<1xi32, #tpu.memory_space<smem>>) -> (i32, i32) {
    %c0_i32 = arith.constant 0 : i32
    %c0_i32_0 = arith.constant 0 : i32
    return %arg0, %c0_i32 : i32, i32
  }
}

</mosaic_0001>

<bundles_post_ra>
// kernel: model_forward.1
= control target key start
LH: loop header
LB: loop body
LE: loop exit
PB: predicated region body
PF: predicated region fallthrough
CT: control target
= control target key end

     0   :  { %v238_v1 = vmov 0.0   ;;  %s288_s0 = inlined_call_operand.<no memory space> [shape: s32[1], index: 0, kind: input, shape index: {}]   ;;  %s289_s1 = inlined_call_operand.vmem [shape: f32[8,128], index: 1, kind: input, shape index: {}]   ;;  %s290_s2 = inlined_call_operand.vmem [shape: bf16[16,128], index: 2, kind: input, shape index: {}]   ;;  %s291_s3 = inlined_call_operand.hbm [shape: f32[8,128], index: 3, kind: output, shape index: {}]  }
   0x1   :  { %v207_v0 = vld [vmem:[%s290_s2] sm:$0xff]   ;;  %188 = vmatprep.subr.bf16.mxu0 %v238_v1  ;;  %194 = vmatprep.subr.bf16.mxu1 %v238_v1 }
   0x2   :  { %v19_v2 = vld [vmem:[%s289_s1] sm:$0xff] }
   0x3   :  { %9 = vsyncpa [#allocation8], 0  ;;  %189 = vmatpush3.bf16.xpose.msra.mxu0 %v207_v0  ;;  %vm239_vm0 = vmmov 0   ;;  %v20_v3 = vmul.f32 10.0, %v19_v2  ;;  %195 = vmatpush3.bf16.msra.mxu1 %v207_v0  ;;  %vm23_vm1 = vcmask 7168   ;;  %v240_v6 = vmov -inf  }
   0x4   :  { %190 = vmatprep.mubr.msk.bf16.mxu0 %vm239_vm0, %v238_v1  ;;  %196 = vmatprep.mubr.msk.bf16.mxu1 %vm239_vm0, %v238_v1  ;;  %24 = vst.msk [vmem:[#allocation2] sm:$0xff] %vm23_vm1, %v240_v6  ;;  %25 = vst.msk [vmem:[#allocation3] sm:$0xff] %vm23_vm1, %v238_v1  ;;  %vm77_vm2 = vcmask 130048   ;;  %v241_v12 = vmov 0   ;;  %s242_s0 = smov [#allocation7]  }
   0x5   :  { %v21_v4 = vpack.c.bf16 %v20_v3, %v20_v3  ;;  %205 = vset.pattern.permute.xlu0 %v241_v12  ;;  %206 = vset.pattern.permute.xlu1 %v241_v12  ;;  %s174_s1 = sshll.u32 %s242_s0, 4  ;;  %s175_s1 = int_to_ptr.vmem [resolvable:$true] %s174_s1 }
   0x6   :  { %s214_s2 = scalar_lea.vmem %s175_s1, 128  ;;  %p219_p1 = scmp.lt.s32.totalorder %s175_s1, %s175_s1 }
   0x7   :  { %22 = vst [vmem:[#allocation4] sm:$0xf] %v21_v4  ;;  %p215_p0 = scmp.ne.s32.totalorder %s175_s1, %s214_s2  ;;  %p220_p2 = scmp.lt.s32.totalorder %s214_s2, %s214_s2 }
   0x9   :  { %p221_p3 = por %p220_p2, %p219_p1 }
   0xb   :  { %v76_v13 = vld [vmem:[#allocation2] sm:$0xff]  ;;  %v93_v25 = vld [vmem:[#allocation3] sm:$0xff]  ;;  %p222_p4 = pnand %p221_p3, %p215_p0 }
   0xe   :  { %v27_v5 = vld [vmem:[#allocation4] sm:$0xf] }
   0xf   :  { %191 = vmatmul.mubr.bf16.vlgmr.msra.gmra.mrb[0].mxu0 %v27_v5 }
  0xe2   :  { %v70_v7 = vpop.f32.mrb[0].mxu0 }
  0xe3   :  { %v192_v8 = vpop.f32.mrb[1].mxu0  ;;  %v78_v9 = vsel %vm77_vm2, %v70_v7, -inf }
  0xe4   :  { %79 = vmax.xlane.f32.xlu0 %v78_v9  ;;  %v73_v10 = vpop.f32.mrb[2].mxu0 }
  0xe5   :  { %v193_v11 = vpop.f32.mrb[3].mxu0 }
 0x171   :  { %v80_v14 = vpop.xlane.xlu0 %79 }
 0x172   :  { %v81_v15 = vmax.f32 %v76_v13, %v80_v14 }
 0x174   :  { %v82_v16 = vsub.f32 %v76_v13, %v81_v15  ;;  %154 = vst.msk [vmem:[#allocation2] sm:$0xff] %vm23_vm1, %v81_v15  ;;  %87 = vperm.xlu0 %205, %v81_v15  }
 0x176   :  { %v83_v23 = vmul.f32 1.442695, %v82_v16 }
 0x1f3   :  { %v88_v17 = vpop.permute.xlu0 %87 }
 0x1f4   :  { %v90_v18 = vsub.f32 %v70_v7, %v88_v17 }
 0x1f6   :  { %v91_v19 = vmul.f32 1.442695, %v90_v18 }
 0x1f8   :  { %208 = vpow2.f32 %v91_v19 }
 0x1f9   :  { %210 = vpow2.f32 %v83_v23 }
 0x202   :  { %v209_v20 = vpop.eup %208 }
 0x203   :  { %v95_v21 = vsel %vm77_vm2, %v209_v20, 0.0  ;;  %v108_v22 = vpack.c.bf16 %v209_v20, %v209_v20  ;;  %v211_v24 = vpop.eup %210 }
 0x204   :  { %96 = vadd.xlane.f32.xlu1 %v95_v21  ;;  %v94_v26 = vmul.f32 %v211_v24, %v93_v25 }
 0x205   :  { %197 = vmatmul.mubr.msk.bf16.vlgmr.msra.gmra.mrb[0].mxu1 %vm77_vm2, %v108_v22 }
 0x215   :  { %104 = vperm.xlu1 %206, %v211_v24  }
 0x291   :  { %v97_v27 = vpop.xlane.xlu1 %96 }
 0x292   :  { %v98_v28 = vadd.f32 %v97_v27, %v94_v26 }
 0x294   :  { %100 = vst.msk [vmem:[#allocation3] sm:$0xff] %vm23_vm1, %v98_v28 }
 0x295   :  { %v105_v35 = vpop.permute.xlu1 %104 }
 0x296   :  { %v107_v36 = vmul.f32 0.0, %v105_v35 }
 0x29b   :  { %v158_v29 = vld [vmem:[#allocation3] sm:$0xff] }
 0x29c   :  { %212 = vrcp.f32 %v158_v29 }
 0x2a6   :  { %v213_v30 = vpop.eup %212 }
 0x2a7   :  { %163 = vperm.xlu1 %206, %v213_v30  }
 0x2d8   :  { %v146_v31 = vpop.f32.mrb[0].mxu1 }
 0x2d9   :  { %v198_v32 = vpop.f32.mrb[1].mxu1  ;;  %v152_v37 = vadd.f32 %v146_v31, %v107_v36 }
 0x2da   :  { %v149_v33 = vpop.f32.mrb[2].mxu1 }
 0x2db   :  { %v199_v34 = vpop.f32.mrb[3].mxu1 }
 0x326   :  { %v164_v38 = vpop.permute.xlu1 %163 }
 0x327   :  { %v166_v39 = vmul.f32 %v164_v38, %v152_v37 }
 0x329   :  { %167 = vst [vmem:[#allocation7] sm:$0xff] %v166_v39 }
 0x32a   :  { %225 = shalt.err (!%p222_p4)
}
 0x32b   :  { %s226_s18 = scalar_lea.hbm %s291_s3, 128 }
 0x32c   :  { %p227_p5 = scmp.ne.s32.totalorder %s291_s3, %s226_s18  ;;  %p230_p6 = scmp.lt.u32.totalorder %s226_s18, %s291_s3 }
 0x32e   :  { %p232_p7 = pnand %p230_p6, %p227_p5 }
 0x330   :  { %235 = shalt.err (!%p232_p7)
}
 0x331   :  { %177 = dma.vmem_to_hbm [thread:$0]  %s175_s1, 128, %s291_s3, [#allocation8]  }
 0x332   :  { %236 = dma.done.wait [#allocation8], 128  }
 0x333   :  { %237 = vsyncadd [#allocation8], 4294967168 }
 0x334   :  { %181 = vsyncpa [#allocation8], 1 }

</bundles_post_ra>
